<compile_context>
chip_gen: v7x
topology: tpu7x:2x2x1
jax: 0.10.0
libtpu: 0.0.40
codegen_flags: <defaults>
</compile_context>

<pallas_src>
import jax
import jax.numpy as jnp
from jax.experimental import pallas as pl
from jax.experimental.pallas import tpu as pltpu

HIDDEN = 128   # fc1/fc2 width (matches the PyTorch module)
HEAD_W = 128   # lane-padded fused head width (actor cols + critic col + zero pad)


def _actor_critic_kernel(state_ref, w1_ref, wstack_ref, bstack_ref, out_ref):
    """One batch tile: fc1+relu, fc2+relu, fused (actor|critic) head, lane-dense out.

    out lanes: 0 -> sigmoid(actor[:, 0]), 1 -> 30*tanh(actor[:, 1]),
               2 -> critic value, 3.. -> 0.
    """
    x = state_ref[...]                                                   # (TB, D) f32

    b1 = bstack_ref[0:1, :]                                              # (1, 128)
    b2 = bstack_ref[1:2, :]                                              # (1, 128)
    bh = bstack_ref[2:3, :]                                              # (1, 128)

    # fc1 + relu
    h = jnp.dot(x, w1_ref[...], preferred_element_type=jnp.float32) + b1
    h = jnp.maximum(h, 0.0)                                              # (TB, 128)

    # fc2 + relu   (wstack[0] == w2)
    h = jnp.dot(h, wstack_ref[0], preferred_element_type=jnp.float32) + b2
    h = jnp.maximum(h, 0.0)                                              # (TB, 128)

    # fused actor|critic head  (wstack[1] == [wa | wc | 0-pad])
    head = jnp.dot(h, wstack_ref[1], preferred_element_type=jnp.float32) + bh  # (TB, 128)

    # per-lane post-processing, full width (no sub-lane slices)
    lane = jax.lax.broadcasted_iota(jnp.int32, head.shape, dimension=1)
    sig = jax.nn.sigmoid(head)                                           # EUP slot
    tnh = jnp.tanh(head) * 30.0
    out = jnp.where(lane == 0, sig,
          jnp.where(lane == 1, tnh,
          jnp.where(lane == 2, head, 0.0)))
    out_ref[...] = out                                                   # one lane-dense store


def _round_up(x, m):
    return (x + m - 1) // m * m


def pack_params(p, action_size):
    """Pack 8 per-layer tensors into 3 arrays (fewer, bigger DMAs)."""
    assert action_size == 2, "forward() hard-codes action columns 0 and 1"
    whead = jnp.zeros((HIDDEN, HEAD_W), jnp.float32)
    whead = whead.at[:, :action_size].set(p["wa"])                       # actor cols 0..1
    whead = whead.at[:, action_size:action_size + 1].set(p["wc"])        # critic col 2
    wstack = jnp.stack([p["w2"], whead], axis=0)                         # (2, 128, 128)

    bstack = jnp.zeros((3, HEAD_W), jnp.float32)
    bstack = bstack.at[0].set(p["b1"][0])
    bstack = bstack.at[1].set(p["b2"][0])
    bstack = bstack.at[2, :action_size].set(p["ba"][0])
    bstack = bstack.at[2, action_size].set(p["bc"][0, 0])
    return p["w1"], wstack, bstack                                       # (D,128), (2,128,128), (3,128)


def _pick_tiling(B, tile_b):
    """Pick (tb, b_pad) so that tb is a multiple of 8, tb <= tile_b, b_pad = tb * grid
    covers B with minimal padded rows and balanced tiles across grid steps / cores."""
    b8 = _round_up(B, 8)                        # f32 sublane multiple
    grid = pl.cdiv(b8, min(tile_b, b8))         # number of grid steps needed
    tb = _round_up(pl.cdiv(b8, grid), 8)        # balanced tile size, multiple of 8
    return tb, tb * grid


def actor_critic_forward(state, packed, *, action_size=2, tile_b=256):
    """state: (B, input_size) f32.  packed: output of pack_params.
    Returns (action (B, 2), value (B, 1))."""
    w1, wstack, bstack = packed
    B, D = state.shape

    # Big tiles amortize the ~0.35 us per-grid-step overhead; weights stay
    # VMEM-resident across steps (index_map returns the same block every step).
    tb, b_pad = _pick_tiling(B, tile_b)
    if b_pad != B:
        state = jnp.pad(state, ((0, b_pad - B), (0, 0)))

    out = pl.pallas_call(
        _actor_critic_kernel,
        out_shape=jax.ShapeDtypeStruct((b_pad, HEAD_W), jnp.float32),
        grid=(b_pad // tb,),
        in_specs=[
            pl.BlockSpec((tb, D), lambda i: (i, 0)),                     # state tile
            pl.BlockSpec((D, HIDDEN), lambda i: (0, 0)),                 # w1 (resident)
            pl.BlockSpec((2, HIDDEN, HEAD_W), lambda i: (0, 0, 0)),      # w2 + fused head (resident)
            pl.BlockSpec((3, HEAD_W), lambda i: (0, 0)),                 # biases (resident)
        ],
        out_specs=pl.BlockSpec((tb, HEAD_W), lambda i: (i, 0)),
        compiler_params=pltpu.CompilerParams(
            dimension_semantics=("parallel",),   # shard batch tiles across TCs (v7x megacore)
        ),
    )(state, w1, wstack, bstack)

    # Only the exact lanes the model defines leak out; padded lanes/rows are dropped.
    action = out[:B, 0:2]
    value = out[:B, action_size:action_size + 1]
    return action, value


def init_params(key, input_size, action_size):
    """nn.Linear-style init (uniform +-1/sqrt(fan_in)); weights stored as (in, out)."""
    def linear(k, fan_in, fan_out):
        kw, kb = jax.random.split(k)
        bound = 1.0 / jnp.sqrt(fan_in)
        w = jax.random.uniform(kw, (fan_in, fan_out), jnp.float32, -bound, bound)
        b = jax.random.uniform(kb, (1, fan_out), jnp.float32, -bound, bound)
        return w, b

    k1, k2, k3, k4 = jax.random.split(key, 4)
    w1, b1 = linear(k1, input_size, HIDDEN)
    w2, b2 = linear(k2, HIDDEN, HIDDEN)
    wa, ba = linear(k3, HIDDEN, action_size)
    wc, bc = linear(k4, HIDDEN, 1)
    return dict(w1=w1, b1=b1, w2=w2, b2=b2, wa=wa, ba=ba, wc=wc, bc=bc)


def reference_forward(state, p):
    """Pure-JAX reference matching the PyTorch module."""
    h = jnp.maximum(state @ p["w1"] + p["b1"], 0.0)
    h = jnp.maximum(h @ p["w2"] + p["b2"], 0.0)
    am = h @ p["wa"] + p["ba"]
    sv = h @ p["wc"] + p["bc"]
    lin = jax.nn.sigmoid(am[:, 0:1])
    ang = jnp.tanh(am[:, 1:2]) * 30.0
    return jnp.concatenate([lin, ang], axis=1), sv


if __name__ == "__main__":
    key = jax.random.PRNGKey(0)
    k_params, k_state1, k_state2 = jax.random.split(key, 3)

    input_size = 16    # small synthetic observation size
    action_size = 2    # forward() uses action columns 0 and 1
    batch = 2

    params = init_params(k_params, input_size, action_size)
    packed = pack_params(params, action_size)

    # small batch (single padded tile)
    state = jax.random.normal(k_state1, (batch, input_size), jnp.float32)
    action, value = actor_critic_forward(state, packed)
    jax.block_until_ready((action, value))

    ref_action, ref_value = reference_forward(state, params)
    assert action.shape == (batch, 2) and value.shape == (batch, 1)
    assert jnp.allclose(action, ref_action, atol=1e-5, rtol=1e-5)
    assert jnp.allclose(value, ref_value, atol=1e-5, rtol=1e-5)

    # larger ragged batch (exercises multi-step grid + balanced-tile padding path)
    big_b = 260
    state_big = jax.random.normal(k_state2, (big_b, input_size), jnp.float32)
    action_b, value_b = actor_critic_forward(state_big, packed)
    jax.block_until_ready((action_b, value_b))
    ref_action_b, ref_value_b = reference_forward(state_big, params)
    assert action_b.shape == (big_b, 2) and value_b.shape == (big_b, 1)
    assert jnp.allclose(action_b, ref_action_b, atol=1e-5, rtol=1e-5)
    assert jnp.allclose(value_b, ref_value_b, atol=1e-5, rtol=1e-5)

    print("KERNEL_OK")
</pallas_src>

<mosaic_0001>
module attributes {stable_mosaic.version = 11 : i64} {
  func.func @_actor_critic_kernel(%arg0: i32, %arg1: memref<8x16xf32, #tpu.memory_space<vmem>>, %arg2: memref<16x128xf32, #tpu.memory_space<vmem>>, %arg3: memref<2x128x128xf32, #tpu.memory_space<vmem>>, %arg4: memref<3x128xf32, #tpu.memory_space<vmem>>, %arg5: memref<8x128xf32, #tpu.memory_space<vmem>>) attributes {dimension_semantics = [#tpu.dimension_semantics<parallel>], iteration_bounds = array<i64: 1>, scalar_prefetch = 0 : i64, scratch_operands = 0 : i64, tpu.core_type = #tpu.core_type<tc>, window_params = [{transform_indices = @transform_0, window_bounds = array<i64: 8, 16>}, {pipeline_mode = #tpu.pipeline_mode<synchronous>, transform_indices = @transform_1, window_bounds = array<i64: 16, 128>}, {pipeline_mode = #tpu.pipeline_mode<synchronous>, transform_indices = @transform_2, window_bounds = array<i64: 2, 128, 128>}, {pipeline_mode = #tpu.pipeline_mode<synchronous>, transform_indices = @transform_3, window_bounds = array<i64: 3, 128>}, {transform_indices = @transform_4, window_bounds = array<i64: 8, 128>}]} {
    %c0 = arith.constant 0 : index
    %c0_0 = arith.constant 0 : index
    %0 = vector.load %arg1[%c0, %c0_0] : memref<8x16xf32, #tpu.memory_space<vmem>>, vector<8x16xf32>
    %c0_1 = arith.constant 0 : index
    %c0_2 = arith.constant 0 : index
    %1 = vector.load %arg4[%c0_1, %c0_2] : memref<3x128xf32, #tpu.memory_space<vmem>>, vector<1x128xf32>
    %c1 = arith.constant 1 : index
    %c0_3 = arith.constant 0 : index
    %2 = vector.load %arg4[%c1, %c0_3] : memref<3x128xf32, #tpu.memory_space<vmem>>, vector<1x128xf32>
    %c2 = arith.constant 2 : index
    %c0_4 = arith.constant 0 : index
    %3 = vector.load %arg4[%c2, %c0_4] : memref<3x128xf32, #tpu.memory_space<vmem>>, vector<1x128xf32>
    %c0_5 = arith.constant 0 : index
    %c0_6 = arith.constant 0 : index
    %4 = vector.load %arg2[%c0_5, %c0_6] : memref<16x128xf32, #tpu.memory_space<vmem>>, vector<16x128xf32>
    %cst = arith.constant dense<0.000000e+00> : vector<8x128xf32>
    %5 = tpu.matmul %0, %4, %cst {dimension_numbers = #tpu.dot_dimension_numbers<[1], [0], [0], [1], [0, 0, 1, 1], [], []>} : vector<8x16xf32>, vector<16x128xf32>, vector<8x128xf32> -> vector<8x128xf32>
    %6 = vector.broadcast %1 : vector<1x128xf32> to vector<8x128xf32>
    %7 = arith.addf %5, %6 : vector<8x128xf32>
    %cst_7 = arith.constant 0.000000e+00 : f32
    %8 = vector.broadcast %cst_7 : f32 to vector<8x128xf32>
    %9 = arith.maximumf %7, %8 : vector<8x128xf32>
    %c0_8 = arith.constant 0 : index
    %c0_9 = arith.constant 0 : index
    %c0_10 = arith.constant 0 : index
    %10 = vector.load %arg3[%c0_8, %c0_9, %c0_10] : memref<2x128x128xf32, #tpu.memory_space<vmem>>, vector<1x128x128xf32>
    %11 = vector.shape_cast %10 : vector<1x128x128xf32> to vector<128x128xf32>
    %cst_11 = arith.constant dense<0.000000e+00> : vector<8x128xf32>
    %12 = tpu.matmul %9, %11, %cst_11 {dimension_numbers = #tpu.dot_dimension_numbers<[1], [0], [0], [1], [0, 0, 1, 1], [], []>} : vector<8x128xf32>, vector<128x128xf32>, vector<8x128xf32> -> vector<8x128xf32>
    %13 = vector.broadcast %2 : vector<1x128xf32> to vector<8x128xf32>
    %14 = arith.addf %12, %13 : vector<8x128xf32>
    %cst_12 = arith.constant 0.000000e+00 : f32
    %15 = vector.broadcast %cst_12 : f32 to vector<8x128xf32>
    %16 = arith.maximumf %14, %15 : vector<8x128xf32>
    %c1_13 = arith.constant 1 : index
    %c0_14 = arith.constant 0 : index
    %c0_15 = arith.constant 0 : index
    %17 = vector.load %arg3[%c1_13, %c0_14, %c0_15] : memref<2x128x128xf32, #tpu.memory_space<vmem>>, vector<1x128x128xf32>
    %18 = vector.shape_cast %17 : vector<1x128x128xf32> to vector<128x128xf32>
    %cst_16 = arith.constant dense<0.000000e+00> : vector<8x128xf32>
    %19 = tpu.matmul %16, %18, %cst_16 {dimension_numbers = #tpu.dot_dimension_numbers<[1], [0], [0], [1], [0, 0, 1, 1], [], []>} : vector<8x128xf32>, vector<128x128xf32>, vector<8x128xf32> -> vector<8x128xf32>
    %20 = vector.broadcast %3 : vector<1x128xf32> to vector<8x128xf32>
    %21 = arith.addf %19, %20 : vector<8x128xf32>
    %22 = tpu.iota {dimensions = array<i32: 1>} : vector<8x128xi32>
    %23 = arith.negf %21 : vector<8x128xf32>
    %24 = math.exp %23 : vector<8x128xf32>
    %cst_17 = arith.constant 1.000000e+00 : f32
    %25 = vector.broadcast %cst_17 : f32 to vector<8x128xf32>
    %26 = arith.addf %25, %24 : vector<8x128xf32>
    %27 = arith.divf %25, %26 : vector<8x128xf32>
    %28 = math.tanh %21 : vector<8x128xf32>
    %cst_18 = arith.constant 3.000000e+01 : f32
    %29 = vector.broadcast %cst_18 : f32 to vector<8x128xf32>
    %30 = arith.mulf %28, %29 : vector<8x128xf32>
    %c0_i32 = arith.constant 0 : i32
    %31 = vector.broadcast %c0_i32 : i32 to vector<8x128xi32>
    %32 = arith.cmpi eq, %22, %31 : vector<8x128xi32>
    %c1_i32 = arith.constant 1 : i32
    %33 = vector.broadcast %c1_i32 : i32 to vector<8x128xi32>
    %34 = arith.cmpi eq, %22, %33 : vector<8x128xi32>
    %c2_i32 = arith.constant 2 : i32
    %35 = vector.broadcast %c2_i32 : i32 to vector<8x128xi32>
    %36 = arith.cmpi eq, %22, %35 : vector<8x128xi32>
    %cst_19 = arith.constant 0.000000e+00 : f32
    %37 = vector.broadcast %cst_19 : f32 to vector<8x128xf32>
    %38 = arith.select %36, %21, %37 : vector<8x128xi1>, vector<8x128xf32>
    %39 = arith.select %34, %30, %38 : vector<8x128xi1>, vector<8x128xf32>
    %40 = arith.select %32, %27, %39 : vector<8x128xi1>, vector<8x128xf32>
    %c0_20 = arith.constant 0 : index
    %c0_21 = arith.constant 0 : index
    %41 = vector.load %arg5[%c0_20, %c0_21] : memref<8x128xf32, #tpu.memory_space<vmem>>, vector<8x128xf32>
    tpu.vector_store %arg5[%c0_20, %c0_21], %40 {strides = array<i32>} : memref<8x128xf32, #tpu.memory_space<vmem>>, vector<8x128xf32>,
    return
  }
  func.func @transform_0(%arg0: i32) -> (i32, i32) {
    %c0_i32 = arith.constant 0 : i32
    %c0_i32_0 = arith.constant 0 : i32
    return %arg0, %c0_i32 : i32, i32
  }
  func.func @transform_1(%arg0: i32) -> (i32, i32) {
    %c0_i32 = arith.constant 0 : i32
    %c0_i32_0 = arith.constant 0 : i32
    %c0_i32_1 = arith.constant 0 : i32
    return %c0_i32, %c0_i32_0 : i32, i32
  }
  func.func @transform_2(%arg0: i32) -> (i32, i32, i32) {
    %c0_i32 = arith.constant 0 : i32
    %c0_i32_0 = arith.constant 0 : i32
    %c0_i32_1 = arith.constant 0 : i32
    %c0_i32_2 = arith.constant 0 : i32
    return %c0_i32, %c0_i32_0, %c0_i32_1 : i32, i32, i32
  }
  func.func @transform_3(%arg0: i32) -> (i32, i32) {
    %c0_i32 = arith.constant 0 : i32
    %c0_i32_0 = arith.constant 0 : i32
    %c0_i32_1 = arith.constant 0 : i32
    return %c0_i32, %c0_i32_0 : i32, i32
  }
  func.func @transform_4(%arg0: i32) -> (i32, i32) {
    %c0_i32 = arith.constant 0 : i32
    %c0_i32_0 = arith.constant 0 : i32
    return %arg0, %c0_i32 : i32, i32
  }
}

</mosaic_0001>

<bundles_post_ra>
// kernel: tpu_custom_call.1
= control target key start
LH: loop header
LB: loop body
LE: loop exit
PB: predicated region body
PF: predicated region fallthrough
CT: control target
= control target key end

     0   :  { %9 = vsyncpa [#allocation3], 0  ;;  %s753_s0 = inlined_call_operand.hbm [shape: f32[8,16], index: 0, kind: input, shape index: {}]   ;;  %s754_s1 = inlined_call_operand.hbm [shape: f32[16,128], index: 1, kind: input, shape index: {}]   ;;  %s755_s2 = inlined_call_operand.hbm [shape: f32[2,128,128], index: 2, kind: input, shape index: {}]   ;;  %s756_s3 = inlined_call_operand.vmem [shape: f32[3,128], index: 3, kind: input, shape index: {}]   ;;  %s757_s4 = inlined_call_operand.hbm [shape: f32[8,128], index: 4, kind: output, shape index: {}]  }
   0x1   :  { %10 = vsyncpa [#allocation6], 0 }
   0x2   :  { %11 = vsyncpa [#allocation4], 0  ;;  %s636_s15 = smov [#allocation5]   ;;  %s542_s19 = scalar_lea.hbm %s754_s1, 256 }
   0x3   :  { %s27_s16 = sshll.u32 %s636_s15, 4  ;;  %p543_p0 = scmp.ne.s32.totalorder %s754_s1, %s542_s19  ;;  %s28_s16 = int_to_ptr.vmem [resolvable:$true] %s27_s16 }
   0x4   :  { %p546_p1 = scmp.lt.u32.totalorder %s542_s19, %s754_s1 }
   0x6   :  { %p548_p2 = pnand %p546_p1, %p543_p0 }
   0x8   :  { %551 = shalt.err (!%p548_p2)
}
   0x9   :  { %s552_s24 = scalar_lea.vmem %s28_s16, 256  ;;  %p557_p4 = scmp.lt.s32.totalorder %s28_s16, %s28_s16 }
   0xa   :  { %p553_p3 = scmp.ne.s32.totalorder %s28_s16, %s552_s24  ;;  %p558_p5 = scmp.lt.s32.totalorder %s552_s24, %s552_s24 }
   0xc   :  { %p559_p6 = por %p558_p5, %p557_p4 }
   0xe   :  { %p560_p7 = pnand %p559_p6, %p553_p3 }
  0x10   :  { %563 = shalt.err (!%p560_p7)
}
  0x11   :  { %s637_s25 = smov 128   ;;  %s638_s26 = smov 8  }
  0x12   :  { %33 = dma.hbm_to_vmem [thread:$0]  %s754_s1, 256, %s28_s16, [#allocation6], %s637_s25, %s637_s25, %s638_s26  }
  0x13   :  { %s639_s29 = smov [#allocation2]   ;;  %s640_s5 = smov [#allocation7]  }
  0x14   :  { %s18_s30 = sshll.u32 %s639_s29, 4  ;;  %s39_s6 = sshll.u32 %s640_s5, 4  ;;  %s19_s30 = int_to_ptr.vmem [resolvable:$true] %s18_s30  ;;  %s40_s6 = int_to_ptr.vmem [resolvable:$true] %s39_s6 }
  0x15   :  { %s564_s9 = scalar_lea.hbm %s753_s0, 128 }
  0x16   :  { %p565_p8 = scmp.ne.s32.totalorder %s753_s0, %s564_s9  ;;  %p568_p9 = scmp.lt.u32.totalorder %s564_s9, %s753_s0 }
  0x18   :  { %p570_p10 = pnand %p568_p9, %p565_p8 }
  0x1a   :  { %573 = shalt.err (!%p570_p10)
}
  0x1b   :  { %s574_s1 = scalar_lea.vmem %s19_s30, 128  ;;  %p579_p12 = scmp.lt.s32.totalorder %s19_s30, %s19_s30 }
  0x1c   :  { %p575_p11 = scmp.ne.s32.totalorder %s19_s30, %s574_s1  ;;  %p580_p13 = scmp.lt.s32.totalorder %s574_s1, %s574_s1 }
  0x1e   :  { %p581_p0 = por %p580_p13, %p579_p12 }
  0x20   :  { %p582_p1 = pnand %p581_p0, %p575_p11 }
  0x22   :  { %585 = shalt.err (!%p582_p1)
}
  0x23   :  { %21 = dma.hbm_to_vmem [thread:$0]  %s753_s0, 128, %s19_s30, [#allocation3]  }
  0x24   :  { %s586_s18 = scalar_lea.hbm %s755_s2, 4096 }
  0x25   :  { %p587_p2 = scmp.ne.s32.totalorder %s755_s2, %s586_s18  ;;  %p590_p3 = scmp.lt.u32.totalorder %s586_s18, %s755_s2 }
  0x27   :  { %p592_p4 = pnand %p590_p3, %p587_p2 }
  0x29   :  { %595 = shalt.err (!%p592_p4)
}
  0x2a   :  { %s596_s23 = scalar_lea.vmem %s40_s6, 4096  ;;  %p601_p6 = scmp.lt.s32.totalorder %s40_s6, %s40_s6 }
  0x2b   :  { %p597_p5 = scmp.ne.s32.totalorder %s40_s6, %s596_s23  ;;  %p602_p7 = scmp.lt.s32.totalorder %s596_s23, %s596_s23 }
  0x2d   :  { %p603_p8 = por %p602_p7, %p601_p6 }
  0x2f   :  { %p604_p9 = pnand %p603_p8, %p597_p5 }
  0x31   :  { %607 = shalt.err (!%p604_p9)
}
  0x32   :  { %45 = dma.hbm_to_vmem [thread:$0]  %s755_s2, 4096, %s40_s6, [#allocation6], %s637_s25, %s637_s25, %s638_s26  }
  0x33   :  { %630 = dma.done.wait [#allocation3], 128  }
  0x34   :  { %631 = vsyncadd [#allocation3], 4294967168 }
  0x35   :  { %632 = dma.done.wait [#allocation6], 4352  }
  0x36   :  { %633 = vsyncadd [#allocation6], 4294962944  ;;  %v641_v0 = vmov 0.0|0.0   ;;  %vm642_vm0 = vmmov 0   ;;  %v643_v1 = vmov 0.0   ;;  %v61_v2 = vld [vmem:[#allocation5] sm:$0xff] }
  0x37   :  { %476 = vmatprep.subr.bf16.mxu0 %v641_v0  ;;  %403 = vmatprep.mubr.msk.f32.mxu0 %vm642_vm0, %v643_v1  ;;  %v62_v3 = vld [vmem:[#allocation5 + $0x8] sm:$0xff]  ;;  %v142_v5 = vld [vmem:[#allocation7] sm:$0xff]  ;;  %v143_v6 = vld [vmem:[#allocation7 + $0x8] sm:$0xff]  ;;  %vm67_vm1 = vcmask 130048   ;;  %s644_s30 = smov [#allocation8]  }
  0x38   :  { %479 = vmatprep.subr.bf16.mxu1 %v641_v0  ;;  %438 = vmatprep.mubr.msk.f32.mxu1 %vm642_vm0, %v643_v1  ;;  %v477_v4 = vpack.c.bf16 %v62_v3, %v61_v2  ;;  %v144_v7 = vld [vmem:[#allocation7 + $0x10] sm:$0xff]  ;;  %v480_v8 = vpack.c.bf16 %v143_v6, %v142_v5  ;;  %v145_v9 = vld [vmem:[#allocation7 + $0x18] sm:$0xff]  ;;  %v57_v10 = vld [vmem:[#allocation2] sm:$0xff]  ;;  %v324_v6 = vlaneseq  ;;  %s347_s5 = sshll.u32 %s644_s30, 4  ;;  %s348_s5 = int_to_ptr.vmem [resolvable:$true] %s347_s5 }
  0x39   :  { %v483_v11 = vpack.c.bf16 %v145_v9, %v144_v7  ;;  %v146_v12 = vld [vmem:[#allocation7 + $0x20] sm:$0xff]  ;;  %v147_v13 = vld [vmem:[#allocation7 + $0x28] sm:$0xff]  ;;  %v148_v15 = vld [vmem:[#allocation7 + $0x30] sm:$0xff]  ;;  %p613_p11 = scmp.lt.s32.totalorder %s348_s5, %s348_s5 }
  0x3a   :  { %478 = vmatpush3.bf16.msra.mxu0 %v477_v4  ;;  %481 = vmatpush3.bf16.msra.mxu1 %v480_v8  ;;  %v486_v14 = vpack.c.bf16 %v147_v13, %v146_v12  ;;  %v149_v16 = vld [vmem:[#allocation7 + $0x38] sm:$0xff]  ;;  %v150_v18 = vld [vmem:[#allocation7 + $0x40] sm:$0xff]  ;;  %v151_v19 = vld [vmem:[#allocation7 + $0x48] sm:$0xff]  ;;  %v325_v8 = vand.u32 127, %v324_v6 }
  0x3b   :  { %503 = vmatprep.subr.bf16.mxu0 %v641_v0  ;;  %482 = vmatprep.subr.bf16.mxu1 %v641_v0  ;;  %v489_v17 = vpack.c.bf16 %v149_v16, %v148_v15  ;;  %v492_v20 = vpack.c.bf16 %v151_v19, %v150_v18  ;;  %v152_v21 = vld [vmem:[#allocation7 + $0x50] sm:$0xff]  ;;  %v153_v22 = vld [vmem:[#allocation7 + $0x58] sm:$0xff]  ;;  %v154_v24 = vld [vmem:[#allocation7 + $0x60] sm:$0xff] }
  0x3c   :  { %v495_v23 = vpack.c.bf16 %v153_v22, %v152_v21  ;;  %v155_v25 = vld [vmem:[#allocation7 + $0x68] sm:$0xff]  ;;  %v156_v27 = vld [vmem:[#allocation7 + $0x70] sm:$0xff]  ;;  %v157_v28 = vld [vmem:[#allocation7 + $0x78] sm:$0xff]  ;;  %vm336_vm2 = vcmp.eq.s32.totalorder %v325_v8, 2  ;;  %vm335_vm3 = vcmp.eq.s32.totalorder %v325_v8, 1  ;;  %vm334_vm4 = vcmp.eq.s32.totalorder %v325_v8, 0 }
  0x3d   :  { %404 = vmatmul.mubr.msk.f32.vlgmr.msra.gmra.mrb[0].mxu0 %vm67_vm1, %v57_v10  ;;  %v498_v26 = vpack.c.bf16 %v155_v25, %v154_v24  ;;  %v501_v29 = vpack.c.bf16 %v157_v28, %v156_v27  ;;  %v234_v30 = vld [vmem:[#allocation7 + $0x80] sm:$0xff]  ;;  %v235_v31 = vld [vmem:[#allocation7 + $0x88] sm:$0xff]  ;;  %v236_v32 = vld [vmem:[#allocation7 + $0x90] sm:$0xff] }
  0x3e   :  { %473 = vmatprep.mubr.msk.f32.mxu0 %vm642_vm0, %v643_v1  ;;  %484 = vmatpush3.bf16.msra.mxu1 %v483_v11  ;;  %v504_v33 = vpack.c.bf16 %v235_v31, %v234_v30  ;;  %v237_v34 = vld [vmem:[#allocation7 + $0x98] sm:$0xff]  ;;  %v238_v36 = vld [vmem:[#allocation7 + $0xa0] sm:$0xff]  ;;  %v239_v37 = vld [vmem:[#allocation7 + $0xa8] sm:$0xff] }
  0x3f   :  { %485 = vmatprep.subr.bf16.mxu1 %v641_v0  ;;  %v507_v35 = vpack.c.bf16 %v237_v34, %v236_v32  ;;  %v510_v38 = vpack.c.bf16 %v239_v37, %v238_v36  ;;  %v240_v39 = vld [vmem:[#allocation7 + $0xb0] sm:$0xff]  ;;  %v241_v40 = vld [vmem:[#allocation7 + $0xb8] sm:$0xff]  ;;  %v242_v42 = vld [vmem:[#allocation7 + $0xc0] sm:$0xff] }
  0x40   :  { %505 = vmatpush3.bf16.msra.mxu0 %v504_v33  ;;  %v513_v41 = vpack.c.bf16 %v241_v40, %v240_v39  ;;  %v243_v43 = vld [vmem:[#allocation7 + $0xc8] sm:$0xff]  ;;  %v244_v45 = vld [vmem:[#allocation7 + $0xd0] sm:$0xff]  ;;  %v245_v46 = vld [vmem:[#allocation7 + $0xd8] sm:$0xff] }
  0x41   :  { %506 = vmatprep.subr.bf16.mxu0 %v641_v0  ;;  %v516_v44 = vpack.c.bf16 %v243_v43, %v242_v42  ;;  %v519_v47 = vpack.c.bf16 %v245_v46, %v244_v45  ;;  %v246_v48 = vld [vmem:[#allocation7 + $0xe0] sm:$0xff]  ;;  %v247_v49 = vld [vmem:[#allocation7 + $0xe8] sm:$0xff]  ;;  %v248_v56 = vld [vmem:[#allocation7 + $0xf0] sm:$0xff] }
  0x42   :  { %487 = vmatpush3.bf16.msra.mxu1 %v486_v14  ;;  %v522_v50 = vpack.c.bf16 %v247_v49, %v246_v48  ;;  %v357_v51 = vld [vmem:[%s756_s3] ss:$0 sm:$0xff]  ;;  %v249_v57 = vld [vmem:[#allocation7 + $0xf8] sm:$0xff]  ;;  %v359_v59 = vld [vmem:[%s756_s3 + $0x1] ss:$0 sm:$0xff] }
  0x43   :  { %488 = vmatprep.subr.bf16.mxu1 %v641_v0  ;;  %v525_v58 = vpack.c.bf16 %v249_v57, %v248_v56 }
  0x44   :  { %508 = vmatpush3.bf16.msra.mxu0 %v507_v35 }
  0x45   :  { %509 = vmatprep.subr.bf16.mxu0 %v641_v0 }
  0x46   :  { %490 = vmatpush3.bf16.msra.mxu1 %v489_v17 }
  0x47   :  { %491 = vmatprep.subr.bf16.mxu1 %v641_v0 }
  0x48   :  { %511 = vmatpush3.bf16.msra.mxu0 %v510_v38 }
  0x49   :  { %512 = vmatprep.subr.bf16.mxu0 %v641_v0 }
  0x4a   :  { %493 = vmatpush3.bf16.msra.mxu1 %v492_v20 }
  0x4b   :  { %494 = vmatprep.subr.bf16.mxu1 %v641_v0 }
  0x4c   :  { %514 = vmatpush3.bf16.msra.mxu0 %v513_v41 }
  0x4d   :  { %515 = vmatprep.subr.bf16.mxu0 %v641_v0 }
  0x4e   :  { %496 = vmatpush3.bf16.msra.mxu1 %v495_v23 }
  0x4f   :  { %497 = vmatprep.subr.bf16.mxu1 %v641_v0 }
  0x50   :  { %517 = vmatpush3.bf16.msra.mxu0 %v516_v44 }
  0x51   :  { %518 = vmatprep.subr.bf16.mxu0 %v641_v0 }
  0x52   :  { %499 = vmatpush3.bf16.msra.mxu1 %v498_v26 }
  0x53   :  { %500 = vmatprep.subr.bf16.mxu1 %v641_v0 }
  0x54   :  { %520 = vmatpush3.bf16.msra.mxu0 %v519_v47 }
  0x55   :  { %521 = vmatprep.subr.bf16.mxu0 %v641_v0 }
  0x56   :  { %502 = vmatpush3.bf16.msra.mxu1 %v501_v29 }
  0x58   :  { %523 = vmatpush3.bf16.msra.mxu0 %v522_v50 }
  0x59   :  { %524 = vmatprep.subr.bf16.mxu0 %v641_v0  ;;  %v360_v0 = vld [vmem:[%s756_s3 + $0x2] ss:$0 sm:$0xff]  ;;  %s608_s3 = scalar_lea.vmem %s348_s5, 128 }
  0x5a   :  { %p609_p10 = scmp.ne.s32.totalorder %s348_s5, %s608_s3  ;;  %p614_p12 = scmp.lt.s32.totalorder %s608_s3, %s608_s3 }
  0x5c   :  { %526 = vmatpush3.bf16.msra.mxu0 %v525_v58  ;;  %p615_p13 = por %p614_p12, %p613_p11 }
  0x5e   :  { %p616_p0 = pnand %p615_p13, %p609_p10 }
 0x110   :  { %v137_v52 = vpop.f32.mrb[0].mxu0 }
 0x111   :  { %v138_v53 = vadd.f32 %v357_v51, %v137_v52  ;;  %v405_v54 = vpop.f32.mrb[1].mxu0 }
 0x113   :  { %v141_v55 = vmax.f32 %v138_v53, 0.0 }
 0x115   :  { %439 = vmatmul.mubr.f32.vlgmr.msra.gmra.mrb[0].mxu1 %v141_v55 }
 0x1e8   :  { %v228_v60 = vpop.f32.mrb[0].mxu1 }
 0x1e9   :  { %v229_v61 = vadd.f32 %v359_v59, %v228_v60  ;;  %v440_v62 = vpop.f32.mrb[1].mxu1 }
 0x1eb   :  { %v232_v63 = vmax.f32 %v229_v61, 0.0 }
 0x1ed   :  { %474 = vmatmul.mubr.f32.vlgmr.msra.gmra.mrb[2].mxu0 %v232_v63 }
 0x2c0   :  { %v320_v1 = vpop.f32.mrb[2].mxu0 }
 0x2c1   :  { %v321_v2 = vadd.f32 %v360_v0, %v320_v1  ;;  %v475_v3 = vpop.f32.mrb[3].mxu0 }
 0x2c3   :  { %v361_v4 = vmul.f32 -1.442695, %v321_v2  ;;  %v337_v11 = vsel %vm336_vm2, %v321_v2, 0.0 }
 0x2c5   :  { %536 = vpow2.f32 %v361_v4 }
 0x2c6   :  { %538 = vtanh.f32 %v321_v2 }
 0x2cf   :  { %v537_v5 = vpop.eup %536 }
 0x2d0   :  { %v329_v7 = vadd.f32 1.0, %v537_v5  ;;  %v539_v9 = vpop.eup %538 }
 0x2d1   :  { %v333_v10 = vmul.f32 30.0, %v539_v9 }
 0x2d2   :  { %540 = vrcp.f32 %v329_v7 }
 0x2d3   :  { %v338_v13 = vsel %vm335_vm3, %v333_v10, %v337_v11 }
 0x2dc   :  { %v541_v12 = vpop.eup %540 }
 0x2dd   :  { %v339_v14 = vsel %vm334_vm4, %v541_v12, %v338_v13 }
 0x2de   :  { %340 = vst [vmem:[#allocation8] sm:$0xff] %v339_v14 }
 0x2df   :  { %619 = shalt.err (!%p616_p0)
}
 0x2e0   :  { %s620_s8 = scalar_lea.hbm %s757_s4, 128 }
 0x2e1   :  { %p621_p1 = scmp.ne.s32.totalorder %s757_s4, %s620_s8  ;;  %p624_p2 = scmp.lt.u32.totalorder %s620_s8, %s757_s4 }
 0x2e3   :  { %p626_p3 = pnand %p624_p2, %p621_p1 }
 0x2e5   :  { %629 = shalt.err (!%p626_p3)
}
 0x2e6   :  { %350 = dma.vmem_to_hbm [thread:$0]  %s348_s5, 128, %s757_s4, [#allocation4]  }
 0x2e7   :  { %634 = dma.done.wait [#allocation4], 128  }
 0x2e8   :  { %635 = vsyncadd [#allocation4], 4294967168 }
 0x2e9   :  { %354 = vsyncpa [#allocation3], 1 }
 0x2ea   :  { %355 = vsyncpa [#allocation6], 1 }
 0x2eb   :  { %356 = vsyncpa [#allocation4], 1 }

</bundles_post_ra>
